<compile_context>
chip_gen: v7x
topology: tpu7x:2x2x1
jax: 0.10.0
libtpu: 0.0.40
codegen_flags: <defaults>
</compile_context>

<pallas_src>
import functools

import jax
import jax.numpy as jnp
import numpy as np
from jax.experimental import pallas as pl
from jax.experimental.pallas import tpu as pltpu

LANES = 128    # lane width; list length is padded up to a multiple of this
_NEG = -1e30   # "minus infinity" used for masking


def _pick_row_tile(n_pad):
    """Largest TM (multiple of 128 that divides n_pad) with TM * n_pad <= 2^20
    elements, keeping ~4 live (TM, n_pad) f32 temporaries under ~16 MiB
    (v7x-safe; also well within v5e/v6e scoped VMEM)."""
    cap = max(LANES, (1 << 20) // n_pad)
    tm = LANES
    while tm * 2 <= cap and n_pad % (tm * 2) == 0:
        tm *= 2
    return tm


def _listmle_kernel(sp_row_ref, sp_col_ref, out_ref, acc_ref, *, n, tm, inv_temp):
    """One row-tile of the ListMLE NLL.

    sp_row_ref : (1, n_pad)  sorted scores (resident across all grid steps)
    sp_col_ref : (tm, 1)     same scores for rows [step*tm, step*tm + tm)
    out_ref    : (1, 1)      scalar loss (written on the last step)
    acc_ref    : (1, 1)      f32 VMEM accumulator (persists across steps)
    """
    n_pad = sp_row_ref.shape[-1]
    step = pl.program_id(0)
    row0 = step * tm
    neg = jnp.float32(_NEG)

    # Scores as a lane vector, scaled by 1/T in f32.  Padding is folded here
    # with one (1, n_pad) compare so the 2-D mask below is just `col >= row`.
    s = sp_row_ref[...].astype(jnp.float32) * jnp.float32(inv_temp)
    if n != n_pad:
        lane = jax.lax.broadcasted_iota(jnp.int32, (1, n_pad), 1)
        s = jnp.where(lane < n, s, neg)

    # Leading score s_i of each row in this tile, as a (tm, 1) column.
    s_i = sp_col_ref[...].astype(jnp.float32) * jnp.float32(inv_temp)

    # Suffix mask for this row tile; the iota matrices die right after.
    row_g = row0 + jax.lax.broadcasted_iota(jnp.int32, (tm, n_pad), 0)
    col = jax.lax.broadcasted_iota(jnp.int32, (tm, n_pad), 1)
    suffix = col >= row_g

    # Masked scores, built once and reused for the max and the exp (masked
    # entries are ~-1e30, so exp(masked - m) underflows to 0; no +inf).
    masked = jnp.where(suffix, s, neg)                             # (tm, n_pad)
    m = jnp.max(masked, axis=1, keepdims=True)                     # (tm, 1)
    denom = jnp.sum(jnp.exp(masked - m), axis=1, keepdims=True)    # (tm, 1) >= 1

    # log p_first = (s_i - m) - log(denom).  For valid rows it is <= 0, so the
    # clamp is a no-op there and only prevents inf on padded rows.
    # Re-exponentiate so the torch `probs[0] + 1e-10` semantics is preserved.
    log_p = jnp.minimum((s_i - m) - jnp.log(denom), jnp.float32(0.0))
    nll = -jnp.log(jnp.exp(log_p) + jnp.float32(1e-10))            # (tm, 1)

    valid = (row0 + jax.lax.broadcasted_iota(jnp.int32, (tm, 1), 0)) < n
    partial = jnp.sum(jnp.where(valid, nll, jnp.float32(0.0)),
                      axis=0, keepdims=True)                       # (1, 1)

    @pl.when(step == 0)
    def _():
        acc_ref[...] = jnp.zeros_like(acc_ref)

    acc_ref[...] += partial

    @pl.when(step == pl.num_programs(0) - 1)
    def _():
        out_ref[...] = acc_ref[...] * jnp.float32(1.0 / n)


def listmle_loss(predictions, targets, temperature=1.0):
    """ListMLE loss for 1-D predictions/targets of shape [batch_size]."""
    assert predictions.ndim == 1 and predictions.shape == targets.shape
    n = predictions.shape[0]

    # TODO(synk): the descending sort of targets + gather of predictions is a
    # data-dependent permutation with no clean Pallas TPU equivalent; it is
    # performed here in the JAX wrapper (XLA sort/gather) and the kernel
    # consumes the already-sorted scores.
    order = jnp.argsort(-targets)                  # descending by target
    sorted_preds = jnp.take(predictions, order)

    n_pad = ((n + LANES - 1) // LANES) * LANES
    sp = jnp.pad(sorted_preds, (0, n_pad - n))     # native dtype; cast in-kernel
    sp_row = sp.reshape(1, n_pad)
    sp_col = sp.reshape(n_pad, 1)

    tm = _pick_row_tile(n_pad)
    grid = (n_pad // tm,)

    kernel = functools.partial(_listmle_kernel, n=n, tm=tm,
                               inv_temp=1.0 / float(temperature))
    out = pl.pallas_call(
        kernel,
        out_shape=jax.ShapeDtypeStruct((1, 1), jnp.float32),
        grid=grid,
        in_specs=[pl.BlockSpec((1, n_pad), lambda i: (0, 0)),   # resident row
                  pl.BlockSpec((tm, 1), lambda i: (i, 0))],     # per-tile column
        out_specs=pl.BlockSpec((1, 1), lambda i: (0, 0)),
        scratch_shapes=[pltpu.VMEM((1, 1), jnp.float32)],
        compiler_params=pltpu.CompilerParams(
            dimension_semantics=("arbitrary",)),
    )(sp_row, sp_col)
    return out[0, 0]


def _reference_numpy(predictions, targets, temperature=1.0):
    """Literal float64 NumPy transcription of the PyTorch forward."""
    preds = np.asarray(predictions, dtype=np.float64)
    tgts = np.asarray(targets, dtype=np.float64)
    order = np.argsort(-tgts, kind="stable")       # descending by target
    sp = preds[order] / temperature
    n = sp.shape[0]
    loss = 0.0
    for i in range(n):
        r = sp[i:]
        r = r - r.max()
        probs = np.exp(r) / np.exp(r).sum()
        loss -= np.log(probs[0] + 1e-10)
    return loss / n


if __name__ == "__main__":
    key = jax.random.PRNGKey(0)

    # Case 1: n=100 (ragged tail, single row tile).
    kp, kt = jax.random.split(key)
    preds1 = jax.random.normal(kp, (100,), dtype=jnp.float32)
    tgts1 = jax.random.normal(kt, (100,), dtype=jnp.float32)
    loss1 = listmle_loss(preds1, tgts1, temperature=1.0)
    jax.block_until_ready(loss1)
    np.testing.assert_allclose(np.asarray(loss1),
                               _reference_numpy(preds1, tgts1, 1.0),
                               rtol=1e-5, atol=1e-5)

    # Case 2: n=300 (n_pad=384, three row tiles -> exercises the accumulator).
    kp2, kt2 = jax.random.split(jax.random.PRNGKey(1))
    preds2 = jax.random.normal(kp2, (300,), dtype=jnp.float32)
    tgts2 = jax.random.normal(kt2, (300,), dtype=jnp.float32)
    loss2 = listmle_loss(preds2, tgts2, temperature=0.5)
    jax.block_until_ready(loss2)
    np.testing.assert_allclose(np.asarray(loss2),
                               _reference_numpy(preds2, tgts2, 0.5),
                               rtol=1e-5, atol=1e-5)

    print("KERNEL_OK")
</pallas_src>

<mosaic_0001>
module attributes {stable_mosaic.version = 11 : i64} {
  func.func @_listmle_kernel(%arg0: i32, %arg1: memref<1x128xf32, #tpu.memory_space<vmem>>, %arg2: memref<128x1xf32, #tpu.memory_space<vmem>>, %arg3: memref<1x1xf32, #tpu.memory_space<vmem>>, %arg4: memref<1x1xf32, #tpu.memory_space<vmem>>) attributes {dimension_semantics = [#tpu.dimension_semantics<arbitrary>], iteration_bounds = array<i64: 1>, scalar_prefetch = 0 : i64, scratch_operands = 1 : i64, tpu.core_type = #tpu.core_type<tc>, window_params = [{pipeline_mode = #tpu.pipeline_mode<synchronous>, transform_indices = @transform_0, window_bounds = array<i64: 1, 128>}, {transform_indices = @transform_1, window_bounds = array<i64: 128, 1>}, {pipeline_mode = #tpu.pipeline_mode<synchronous>, transform_indices = @transform_2, window_bounds = array<i64: 1, 1>}]} {
    %c128_i32 = arith.constant 128 : i32
    %0 = arith.muli %arg0, %c128_i32 : i32
    %c0 = arith.constant 0 : index
    %c0_0 = arith.constant 0 : index
    %1 = vector.load %arg1[%c0, %c0_0] : memref<1x128xf32, #tpu.memory_space<vmem>>, vector<1x128xf32>
    %cst = arith.constant 1.000000e+00 : f32
    %2 = vector.broadcast %cst : f32 to vector<1x128xf32>
    %3 = arith.mulf %1, %2 : vector<1x128xf32>
    %4 = tpu.iota {dimensions = array<i32: 1>} : vector<1x128xi32>
    %c100_i32 = arith.constant 100 : i32
    %5 = vector.broadcast %c100_i32 : i32 to vector<1x128xi32>
    %6 = arith.cmpi slt, %4, %5 : vector<1x128xi32>
    %cst_1 = arith.constant -1.000000e+30 : f32
    %7 = vector.broadcast %cst_1 : f32 to vector<1x128xf32>
    %8 = arith.select %6, %3, %7 : vector<1x128xi1>, vector<1x128xf32>
    %c0_2 = arith.constant 0 : index
    %c0_3 = arith.constant 0 : index
    %9 = vector.load %arg2[%c0_2, %c0_3] : memref<128x1xf32, #tpu.memory_space<vmem>>, vector<128x1xf32>
    %cst_4 = arith.constant 1.000000e+00 : f32
    %10 = vector.broadcast %cst_4 : f32 to vector<128x1xf32>
    %11 = arith.mulf %9, %10 : vector<128x1xf32>
    %12 = tpu.iota {dimensions = array<i32: 0>} : vector<128x128xi32>
    %13 = vector.broadcast %0 : i32 to vector<128x128xi32>
    %14 = arith.addi %13, %12 : vector<128x128xi32>
    %15 = tpu.iota {dimensions = array<i32: 1>} : vector<128x128xi32>
    %16 = arith.cmpi sge, %15, %14 : vector<128x128xi32>
    %cst_5 = arith.constant -1.000000e+30 : f32
    %17 = vector.shape_cast %8 : vector<1x128xf32> to vector<1x128xf32>
    %18 = vector.broadcast %17 : vector<1x128xf32> to vector<128x128xf32>
    %19 = vector.broadcast %cst_5 : f32 to vector<128x128xf32>
    %20 = arith.select %16, %18, %19 : vector<128x128xi1>, vector<128x128xf32>
    %cst_6 = arith.constant dense<0xFF800000> : vector<128xf32>
    %21 = vector.multi_reduction <maximumf>, %20, %cst_6 [1] : vector<128x128xf32> to vector<128xf32>
    %22 = vector.shape_cast %21 : vector<128xf32> to vector<128x1xf32>
    %23 = vector.broadcast %22 : vector<128x1xf32> to vector<128x128xf32>
    %24 = arith.subf %20, %23 : vector<128x128xf32>
    %25 = math.exp %24 : vector<128x128xf32>
    %cst_7 = arith.constant dense<0.000000e+00> : vector<128xf32>
    %26 = vector.multi_reduction <add>, %25, %cst_7 [1] : vector<128x128xf32> to vector<128xf32>
    %27 = vector.shape_cast %26 : vector<128xf32> to vector<128x1xf32>
    %28 = arith.subf %11, %22 : vector<128x1xf32>
    %29 = math.log %27 : vector<128x1xf32>
    %30 = arith.subf %28, %29 : vector<128x1xf32>
    %cst_8 = arith.constant 0.000000e+00 : f32
    %31 = vector.broadcast %cst_8 : f32 to vector<128x1xf32>
    %32 = arith.minimumf %30, %31 : vector<128x1xf32>
    %33 = math.exp %32 : vector<128x1xf32>
    %cst_9 = arith.constant 1.000000e-10 : f32
    %34 = vector.broadcast %cst_9 : f32 to vector<128x1xf32>
    %35 = arith.addf %33, %34 : vector<128x1xf32>
    %36 = math.log %35 : vector<128x1xf32>
    %cst_10 = arith.constant 0.000000e+00 : f32
    %37 = vector.broadcast %cst_10 : f32 to vector<128x1xf32>
    %38 = arith.subf %37, %36 : vector<128x1xf32>
    %39 = tpu.iota {dimensions = array<i32: 0>} : vector<128x1xi32>
    %40 = vector.broadcast %0 : i32 to vector<128x1xi32>
    %41 = arith.addi %40, %39 : vector<128x1xi32>
    %c100_i32_11 = arith.constant 100 : i32
    %42 = vector.broadcast %c100_i32_11 : i32 to vector<128x1xi32>
    %43 = arith.cmpi slt, %41, %42 : vector<128x1xi32>
    %cst_12 = arith.constant 0.000000e+00 : f32
    %44 = vector.broadcast %cst_12 : f32 to vector<128x1xf32>
    %45 = arith.select %43, %38, %44 : vector<128x1xi1>, vector<128x1xf32>
    %cst_13 = arith.constant dense<0.000000e+00> : vector<1xf32>
    %46 = vector.multi_reduction <add>, %45, %cst_13 [0] : vector<128x1xf32> to vector<1xf32>
    %47 = vector.shape_cast %46 : vector<1xf32> to vector<1x1xf32>
    %c0_i32 = arith.constant 0 : i32
    %48 = arith.cmpi eq, %arg0, %c0_i32 : i32
    %49 = arith.extui %48 : i1 to i32
    %c0_i32_14 = arith.constant 0 : i32
    %50 = arith.cmpi ne, %49, %c0_i32_14 : i32
    scf.if %50 {
      %cst_21 = arith.constant 0.000000e+00 : f32
      %57 = vector.broadcast %cst_21 : f32 to vector<1x1xf32>
      %c0_22 = arith.constant 0 : index
      %c0_23 = arith.constant 0 : index
      %58 = vector.load %arg4[%c0_22, %c0_23] : memref<1x1xf32, #tpu.memory_space<vmem>>, vector<1x1xf32>
      tpu.vector_store %arg4[%c0_22, %c0_23], %57 {strides = array<i32>} : memref<1x1xf32, #tpu.memory_space<vmem>>, vector<1x1xf32>,
    } else {
    }
    %c0_15 = arith.constant 0 : index
    %c0_16 = arith.constant 0 : index
    %51 = vector.load %arg4[%c0_15, %c0_16] : memref<1x1xf32, #tpu.memory_space<vmem>>, vector<1x1xf32>
    %52 = arith.addf %51, %47 : vector<1x1xf32>
    %c0_17 = arith.constant 0 : index
    %c0_18 = arith.constant 0 : index
    %53 = vector.load %arg4[%c0_17, %c0_18] : memref<1x1xf32, #tpu.memory_space<vmem>>, vector<1x1xf32>
    tpu.vector_store %arg4[%c0_17, %c0_18], %52 {strides = array<i32>} : memref<1x1xf32, #tpu.memory_space<vmem>>, vector<1x1xf32>,
    %c0_i32_19 = arith.constant 0 : i32
    %54 = arith.cmpi eq, %arg0, %c0_i32_19 : i32
    %55 = arith.extui %54 : i1 to i32
    %c0_i32_20 = arith.constant 0 : i32
    %56 = arith.cmpi ne, %55, %c0_i32_20 : i32
    scf.if %56 {
      %c0_21 = arith.constant 0 : index
      %c0_22 = arith.constant 0 : index
      %57 = vector.load %arg4[%c0_21, %c0_22] : memref<1x1xf32, #tpu.memory_space<vmem>>, vector<1x1xf32>
      %cst_23 = arith.constant 0.00999999977 : f32
      %58 = vector.broadcast %cst_23 : f32 to vector<1x1xf32>
      %59 = arith.mulf %57, %58 : vector<1x1xf32>
      %c0_24 = arith.constant 0 : index
      %c0_25 = arith.constant 0 : index
      %60 = vector.load %arg3[%c0_24, %c0_25] : memref<1x1xf32, #tpu.memory_space<vmem>>, vector<1x1xf32>
      tpu.vector_store %arg3[%c0_24, %c0_25], %59 {strides = array<i32>} : memref<1x1xf32, #tpu.memory_space<vmem>>, vector<1x1xf32>,
    } else {
    }
    return
  }
  func.func @transform_0(%arg0: i32) -> (i32, i32) {
    %c0_i32 = arith.constant 0 : i32
    %c0_i32_0 = arith.constant 0 : i32
    %c0_i32_1 = arith.constant 0 : i32
    return %c0_i32, %c0_i32_0 : i32, i32
  }
  func.func @transform_1(%arg0: i32) -> (i32, i32) {
    %c0_i32 = arith.constant 0 : i32
    %c0_i32_0 = arith.constant 0 : i32
    return %arg0, %c0_i32 : i32, i32
  }
  func.func @transform_2(%arg0: i32) -> (i32, i32) {
    %c0_i32 = arith.constant 0 : i32
    %c0_i32_0 = arith.constant 0 : i32
    %c0_i32_1 = arith.constant 0 : i32
    return %c0_i32, %c0_i32_0 : i32, i32
  }
}

</mosaic_0001>

<bundles_post_ra>
// kernel: tpu_custom_call.1
= control target key start
LH: loop header
LB: loop body
LE: loop exit
PB: predicated region body
PF: predicated region fallthrough
CT: control target
= control target key end

     0   :  { %v14_v0 = vlaneseq  ;;  %s769_s0 = inlined_call_operand.vmem [shape: f32[1,128], index: 0, kind: input, shape index: {}]   ;;  %s770_s1 = inlined_call_operand.vmem [shape: f32[128,1], index: 1, kind: input, shape index: {}]   ;;  %s771_s2 = inlined_call_operand.hbm [shape: f32[1,1], index: 2, kind: output, shape index: {}]  }
   0x1   :  { %7 = vsyncpa [#allocation4], 0  ;;  %v13_v1 = vld [vmem:[%s769_s0] sm:$0x1]  ;;  %vm466_vm14 = vcmask 0   ;;  %vm424_vm15 = vcmask 7168  }
   0x2   :  { %v15_v2 = vand.u32 127, %v14_v0  ;;  %v35_v3 = vshrl.u32 %v14_v0, 7 }
   0x4   :  { %vm16_vm0 = vcmp.lt.s32.totalorder %v15_v2, 100  ;;  %v86_v4 = vsub.s32 0, %v35_v3  ;;  %v37_v5 = vadd.s32 16, %v35_v3  ;;  %vm68_vm1 = vcmp.ge.s32.totalorder %v15_v2, %v35_v3 }
   0x5   :  { %v17_v6 = vsel %vm16_vm0, %v13_v1, -1e+30  ;;  %v36_v7 = vadd.s32 8, %v35_v3  ;;  %v38_v8 = vadd.s32 24, %v35_v3  ;;  %v39_v10 = vadd.s32 32, %v35_v3 }
   0x6   :  { %v87_v9 = vrot.slane %v17_v6, %v86_v4  ;;  %vm70_vm2 = vcmp.ge.s32.totalorder %v15_v2, %v37_v5  ;;  %v40_v11 = vadd.s32 40, %v35_v3  ;;  %v41_v16 = vadd.s32 48, %v35_v3 }
   0x7   :  { %vm69_vm3 = vcmp.ge.s32.totalorder %v15_v2, %v36_v7  ;;  %vm71_vm4 = vcmp.ge.s32.totalorder %v15_v2, %v38_v8  ;;  %vm72_vm5 = vcmp.ge.s32.totalorder %v15_v2, %v39_v10  ;;  %v42_v17 = vadd.s32 56, %v35_v3 }
   0x8   :  { %v88_v12 = vsel %vm68_vm1, %v87_v9, -1e+30  ;;  %v90_v13 = vsel %vm70_vm2, %v87_v9, -1e+30  ;;  %v89_v14 = vsel %vm69_vm3, %v87_v9, -1e+30  ;;  %vm73_vm6 = vcmp.ge.s32.totalorder %v15_v2, %v40_v11 }
   0x9   :  { %104 = vmax.xlane.f32.xlu0 %v88_v12  ;;  %108 = vmax.xlane.f32.xlu1 %v90_v13  ;;  %v91_v15 = vsel %vm71_vm4, %v87_v9, -1e+30  ;;  %v92_v18 = vsel %vm72_vm5, %v87_v9, -1e+30  ;;  %v93_v19 = vsel %vm73_vm6, %v87_v9, -1e+30  ;;  %vm74_vm7 = vcmp.ge.s32.totalorder %v15_v2, %v41_v16 }
   0xa   :  { %vm75_vm8 = vcmp.ge.s32.totalorder %v15_v2, %v42_v17  ;;  %v43_v20 = vadd.s32 64, %v35_v3  ;;  %v44_v21 = vadd.s32 72, %v35_v3  ;;  %v94_v22 = vsel %vm74_vm7, %v87_v9, -1e+30 }
   0xb   :  { %v95_v23 = vsel %vm75_vm8, %v87_v9, -1e+30  ;;  %v45_v24 = vadd.s32 80, %v35_v3  ;;  %v46_v25 = vadd.s32 88, %v35_v3  ;;  %v642_v28 = vadd.s32 96, %v35_v3 }
   0xc   :  { %vm76_vm9 = vcmp.ge.s32.totalorder %v15_v2, %v43_v20  ;;  %vm77_vm10 = vcmp.ge.s32.totalorder %v15_v2, %v44_v21  ;;  %v622_v20 = vmov 0.0  }
   0xd   :  { %106 = vmax.xlane.f32.xlu0 %v89_v14  ;;  %110 = vmax.xlane.f32.xlu1 %v91_v15  ;;  %v96_v26 = vsel %vm76_vm9, %v87_v9, -1e+30  ;;  %v97_v27 = vsel %vm77_vm10, %v87_v9, -1e+30  ;;  %vm78_vm11 = vcmp.ge.s32.totalorder %v15_v2, %v45_v24  ;;  %vm79_vm12 = vcmp.ge.s32.totalorder %v15_v2, %v46_v25  ;;  %467 = vst.msk [vmem:[#allocation2] sm:$0x1] %vm466_vm14, %v622_v20 }
   0xe   :  { %v98_v29 = vsel %vm78_vm11, %v87_v9, -1e+30  ;;  %v99_v30 = vsel %vm79_vm12, %v87_v9, -1e+30  ;;  %vm80_vm13 = vcmp.ge.s32.totalorder %v15_v2, %v642_v28  ;;  %vm404_vm0 = vcmp.lt.s32.totalorder %v642_v28, 100 }
   0xf   :  { %v645_v31 = vsel %vm80_vm13, %v87_v9, -1e+30 }
  0x11   :  { %112 = vmax.xlane.f32.xlu0 %v92_v18  ;;  %114 = vmax.xlane.f32.xlu1 %v93_v19 }
  0x15   :  { %116 = vmax.xlane.f32.xlu0 %v94_v22  ;;  %118 = vmax.xlane.f32.xlu1 %v95_v23 }
  0x19   :  { %120 = vmax.xlane.f32.xlu0 %v96_v26  ;;  %122 = vmax.xlane.f32.xlu1 %v97_v27 }
  0x1d   :  { %124 = vmax.xlane.f32.xlu0 %v98_v29  ;;  %126 = vmax.xlane.f32.xlu1 %v99_v30 }
  0x21   :  { %128 = vmax.xlane.f32.xlu0 %v645_v31 }
  0x96   :  { %v648_v32 = vpop.xlane.xlu0 %104  ;;  %v650_v33 = vpop.xlane.xlu1 %108 }
  0x97   :  { %v136_v34 = vsub.f32 %v88_v12, %v648_v32  ;;  %v138_v35 = vsub.f32 %v90_v13, %v650_v33 }
  0x99   :  { %v152_v36 = vmul.f32 1.442695, %v136_v34  ;;  %v156_v37 = vmul.f32 1.442695, %v138_v35  ;;  %v20_v35 = vld [vmem:[%s770_s1 + $0x10] sm:$0xff] }
  0x9a   :  { %v654_v38 = vpop.xlane.xlu0 %106  ;;  %v656_v39 = vpop.xlane.xlu1 %110 }
  0x9b   :  { %494 = vpow2.f32 %v152_v36  ;;  %v137_v40 = vsub.f32 %v89_v14, %v654_v38  ;;  %v139_v41 = vsub.f32 %v91_v15, %v656_v39  ;;  %v19_v36 = vld [vmem:[%s770_s1 + $0x8] sm:$0xff] }
  0x9c   :  { %496 = vpow2.f32 %v156_v37 }
  0x9d   :  { %v154_v42 = vmul.f32 1.442695, %v137_v40  ;;  %v158_v43 = vmul.f32 1.442695, %v139_v41 }
  0x9e   :  { %v660_v44 = vpop.xlane.xlu0 %112  ;;  %v662_v45 = vpop.xlane.xlu1 %114 }
  0x9f   :  { %498 = vpow2.f32 %v154_v42  ;;  %v140_v46 = vsub.f32 %v92_v18, %v660_v44  ;;  %v141_v47 = vsub.f32 %v93_v19, %v662_v45  ;;  %v218_v42 = vsub.f32 %v20_v35, %v650_v33 }
  0xa0   :  { %500 = vpow2.f32 %v158_v43 }
  0xa1   :  { %v160_v48 = vmul.f32 1.442695, %v140_v46  ;;  %v162_v49 = vmul.f32 1.442695, %v141_v47 }
  0xa2   :  { %v666_v50 = vpop.xlane.xlu0 %116  ;;  %v668_v51 = vpop.xlane.xlu1 %118 }
  0xa3   :  { %502 = vpow2.f32 %v160_v48  ;;  %v142_v52 = vsub.f32 %v94_v22, %v666_v50  ;;  %v143_v53 = vsub.f32 %v95_v23, %v668_v51  ;;  %v217_v48 = vsub.f32 %v19_v36, %v654_v38 }
  0xa4   :  { %504 = vpow2.f32 %v162_v49  ;;  %v22_v49 = vld [vmem:[%s770_s1 + $0x20] sm:$0xff] }
  0xa5   :  { %v495_v54 = vpop.eup %494  ;;  %v164_v55 = vmul.f32 1.442695, %v142_v52  ;;  %v166_v56 = vmul.f32 1.442695, %v143_v53  ;;  %v21_v53 = vld [vmem:[%s770_s1 + $0x18] sm:$0xff] }
  0xa6   :  { %184 = vadd.xlane.f32.xlu1 %v495_v54  ;;  %v672_v57 = vpop.xlane.xlu0 %120  ;;  %v674_v58 = vpop.xlane.xlu1 %122 }
  0xa7   :  { %v497_v59 = vpop.eup %496  ;;  %506 = vpow2.f32 %v164_v55  ;;  %v144_v60 = vsub.f32 %v96_v26, %v672_v57  ;;  %v145_v61 = vsub.f32 %v97_v27, %v674_v58  ;;  %v18_v26 = vld [vmem:[%s770_s1] sm:$0xff] }
  0xa8   :  { %508 = vpow2.f32 %v166_v56 }
  0xa9   :  { %v499_v62 = vpop.eup %498  ;;  %v168_v63 = vmul.f32 1.442695, %v144_v60  ;;  %v170_v0 = vmul.f32 1.442695, %v145_v61  ;;  %v220_v60 = vsub.f32 %v22_v49, %v660_v44 }
  0xaa   :  { %188 = vadd.xlane.f32.xlu1 %v497_v59  ;;  %186 = vadd.xlane.f32.xlu0 %v499_v62  ;;  %v678_v1 = vpop.xlane.xlu0 %124  ;;  %v680_v2 = vpop.xlane.xlu1 %126 }
  0xab   :  { %v501_v3 = vpop.eup %500  ;;  %510 = vpow2.f32 %v168_v63  ;;  %v146_v4 = vsub.f32 %v98_v29, %v678_v1  ;;  %v147_v5 = vsub.f32 %v99_v30, %v680_v2  ;;  %v216_v29 = vsub.f32 %v18_v26, %v648_v32 }
  0xac   :  { %512 = vpow2.f32 %v170_v0  ;;  %v219_v0 = vsub.f32 %v21_v53, %v656_v39 }
  0xad   :  { %v503_v6 = vpop.eup %502  ;;  %v172_v7 = vmul.f32 1.442695, %v146_v4  ;;  %v174_v8 = vmul.f32 1.442695, %v147_v5 }
  0xae   :  { %190 = vadd.xlane.f32.xlu0 %v501_v3  ;;  %192 = vadd.xlane.f32.xlu1 %v503_v6  ;;  %v684_v9 = vpop.xlane.xlu0 %128  ;;  %v505_v10 = vpop.eup %504  ;;  %v24_v3 = vld [vmem:[%s770_s1 + $0x30] sm:$0xff]  ;;  %v23_v6 = vld [vmem:[%s770_s1 + $0x28] sm:$0xff] }
  0xaf   :  { %514 = vpow2.f32 %v172_v7  ;;  %v148_v11 = vsub.f32 %v645_v31, %v684_v9  ;;  %v222_v39 = vsub.f32 %v24_v3, %v666_v50 }
  0xb0   :  { %516 = vpow2.f32 %v174_v8 }
  0xb1   :  { %v507_v12 = vpop.eup %506  ;;  %v176_v13 = vmul.f32 1.442695, %v148_v11 }
  0xb2   :  { %194 = vadd.xlane.f32.xlu0 %v505_v10  ;;  %196 = vadd.xlane.f32.xlu1 %v507_v12  ;;  %v509_v14 = vpop.eup %508 }
  0xb3   :  { %518 = vpow2.f32 %v176_v13 }
  0xb5   :  { %v511_v15 = vpop.eup %510 }
  0xb6   :  { %198 = vadd.xlane.f32.xlu0 %v509_v14  ;;  %200 = vadd.xlane.f32.xlu1 %v511_v15  ;;  %v513_v16 = vpop.eup %512 }
  0xb9   :  { %v515_v17 = vpop.eup %514 }
  0xba   :  { %202 = vadd.xlane.f32.xlu0 %v513_v16  ;;  %204 = vadd.xlane.f32.xlu1 %v515_v17  ;;  %v517_v18 = vpop.eup %516  ;;  %v221_v17 = vsub.f32 %v23_v6, %v662_v45 }
  0xbd   :  { %v519_v19 = vpop.eup %518 }
  0xbe   :  { %206 = vadd.xlane.f32.xlu0 %v517_v18  ;;  %208 = vadd.xlane.f32.xlu1 %v519_v19  ;;  %v26_v18 = vld [vmem:[%s770_s1 + $0x40] sm:$0xff] }
  0xbf   :  { %v224_v45 = vsub.f32 %v26_v18, %v672_v57 }
 0x133   :  { %v185_v21 = vpop.xlane.xlu1 %184 }
 0x134   :  { %520 = vlog2.f32 %v185_v21  ;;  %v25_v21 = vld [vmem:[%s770_s1 + $0x38] sm:$0xff] }
 0x137   :  { %v189_v22 = vpop.xlane.xlu1 %188  ;;  %v187_v23 = vpop.xlane.xlu0 %186 }
 0x138   :  { %522 = vlog2.f32 %v189_v22 }
 0x139   :  { %524 = vlog2.f32 %v187_v23 }
 0x13b   :  { %v193_v24 = vpop.xlane.xlu1 %192  ;;  %v191_v25 = vpop.xlane.xlu0 %190 }
 0x13c   :  { %526 = vlog2.f32 %v193_v24 }
 0x13d   :  { %528 = vlog2.f32 %v191_v25 }
 0x13e   :  { %v521_v27 = vpop.eup %520 }
 0x13f   :  { %v233_v30 = vmul.f32 0.6931472, %v521_v27  ;;  %v197_v31 = vpop.xlane.xlu1 %196  ;;  %v195_v34 = vpop.xlane.xlu0 %194 }
 0x140   :  { %530 = vlog2.f32 %v197_v31  ;;  %v28_v31 = vld [vmem:[%s770_s1 + $0x50] sm:$0xff] }
 0x141   :  { %v264_v37 = vsub.f32 %v216_v29, %v233_v30  ;;  %532 = vlog2.f32 %v195_v34  ;;  %v223_v30 = vsub.f32 %v25_v21, %v668_v51  ;;  %v226_v51 = vsub.f32 %v28_v31, %v678_v1  ;;  %v29_v1 = vld [vmem:[%s770_s1 + $0x58] sm:$0xff] }
 0x142   :  { %v523_v40 = vpop.eup %522 }
 0x143   :  { %v525_v41 = vpop.eup %524  ;;  %v280_v43 = vmin.f32 %v264_v37, 0.0  ;;  %v237_v32 = vmul.f32 0.6931472, %v523_v40  ;;  %v201_v46 = vpop.xlane.xlu1 %200  ;;  %v27_v37 = vld [vmem:[%s770_s1 + $0x48] sm:$0xff] }
 0x144   :  { %v199_v47 = vpop.xlane.xlu0 %198  ;;  %v235_v52 = vmul.f32 0.6931472, %v525_v41  ;;  %534 = vlog2.f32 %v201_v46  ;;  %v225_v49 = vsub.f32 %v27_v37, %v674_v58 }
 0x145   :  { %v296_v54 = vmul.f32 1.442695, %v280_v43  ;;  %v266_v55 = vsub.f32 %v218_v42, %v237_v32  ;;  %536 = vlog2.f32 %v199_v47 }
 0x146   :  { %v527_v33 = vpop.eup %526  ;;  %v265_v56 = vsub.f32 %v217_v48, %v235_v52 }
 0x147   :  { %v529_v59 = vpop.eup %528  ;;  %538 = vpow2.f32 %v296_v54  ;;  %v282_v38 = vmin.f32 %v266_v55, 0.0  ;;  %v241_v61 = vmul.f32 0.6931472, %v527_v33  ;;  %v205_v62 = vpop.xlane.xlu1 %204  ;;  %v30_v55 = vld [vmem:[%s770_s1 + $0x60] sm:$0xff]  ;;  %s623_s1 = smov [#allocation3]  }
 0x148   :  { %v203_v63 = vpop.xlane.xlu0 %202  ;;  %v281_v4 = vmin.f32 %v265_v56, 0.0  ;;  %v239_v5 = vmul.f32 0.6931472, %v529_v59  ;;  %540 = vlog2.f32 %v205_v62  ;;  %v228_v3 = vsub.f32 %v30_v55, %v684_v9  ;;  %s484_s8 = sshll.u32 %s623_s1, 4  ;;  %s485_s8 = int_to_ptr.vmem [resolvable:$true] %s484_s8 }
 0x149   :  { %v300_v7 = vmul.f32 1.442695, %v282_v38  ;;  %v268_v44 = vsub.f32 %v220_v60, %v241_v61  ;;  %542 = vlog2.f32 %v203_v63  ;;  %s598_s9 = scalar_lea.vmem %s485_s8, 16  ;;  %s602_s10 = scalar_lea.vmem %s485_s8, 32 }
 0x14a   :  { %v531_v8 = vpop.eup %530  ;;  %v298_v10 = vmul.f32 1.442695, %v281_v4  ;;  %v267_v11 = vsub.f32 %v219_v0, %v239_v5  ;;  %p599_p0 = scmp.ne.s32.totalorder %s485_s8, %s598_s9  ;;  %p603_p1 = scmp.lt.s32.totalorder %s485_s8, %s485_s8 }
 0x14b   :  { %v533_v12 = vpop.eup %532  ;;  %544 = vpow2.f32 %v300_v7  ;;  %v284_v13 = vmin.f32 %v268_v44, 0.0  ;;  %v245_v14 = vmul.f32 0.6931472, %v531_v8  ;;  %v209_v15 = vpop.xlane.xlu1 %208  ;;  %v227_v7 = vsub.f32 %v29_v1, %v680_v2  ;;  %p604_p2 = scmp.lt.s32.totalorder %s602_s10, %s598_s9 }
 0x14c   :  { %v207_v16 = vpop.xlane.xlu0 %206  ;;  %546 = vpow2.f32 %v298_v10  ;;  %v283_v19 = vmin.f32 %v267_v11, 0.0  ;;  %v243_v20 = vmul.f32 0.6931472, %v533_v12 }
 0x14d   :  { %v304_v22 = vmul.f32 1.442695, %v284_v13  ;;  %v270_v50 = vsub.f32 %v222_v39, %v245_v14  ;;  %548 = vlog2.f32 %v209_v15  ;;  %p605_p3 = por %p604_p2, %p603_p1 }
 0x14e   :  { %v535_v23 = vpop.eup %534  ;;  %v302_v24 = vmul.f32 1.442695, %v283_v19  ;;  %v269_v25 = vsub.f32 %v221_v17, %v243_v20  ;;  %550 = vlog2.f32 %v207_v16 }
 0x14f   :  { %v537_v26 = vpop.eup %536  ;;  %552 = vpow2.f32 %v304_v22  ;;  %v286_v27 = vmin.f32 %v270_v50, 0.0  ;;  %v249_v29 = vmul.f32 0.6931472, %v535_v23  ;;  %p606_p4 = pnand %p605_p3, %p599_p0 }
 0x150   :  { %554 = vpow2.f32 %v302_v24  ;;  %v285_v34 = vmin.f32 %v269_v25, 0.0  ;;  %v247_v35 = vmul.f32 0.6931472, %v537_v26 }
 0x151   :  { %v539_v36 = vpop.eup %538  ;;  %v308_v40 = vmul.f32 1.442695, %v286_v27  ;;  %v272_v41 = vsub.f32 %v224_v45, %v249_v29 }
 0x152   :  { %v541_v57 = vpop.eup %540  ;;  %v328_v42 = vadd.f32 1e-10, %v539_v36  ;;  %v306_v43 = vmul.f32 1.442695, %v285_v34  ;;  %v271_v32 = vsub.f32 %v223_v30, %v247_v35 }
 0x153   :  { %v543_v46 = vpop.eup %542  ;;  %556 = vpow2.f32 %v308_v40  ;;  %v288_v47 = vmin.f32 %v272_v41, 0.0  ;;  %v253_v48 = vmul.f32 0.6931472, %v541_v57 }
 0x154   :  { %558 = vlog2.f32 %v328_v42  ;;  %v287_v52 = vmin.f32 %v271_v32, 0.0  ;;  %v251_v53 = vmul.f32 0.6931472, %v543_v46 }
 0x155   :  { %v545_v54 = vpop.eup %544  ;;  %560 = vpow2.f32 %v306_v43  ;;  %v312_v33 = vmul.f32 1.442695, %v288_v47  ;;  %v274_v56 = vsub.f32 %v226_v51, %v253_v48 }
 0x156   :  { %v547_v59 = vpop.eup %546  ;;  %v330_v60 = vadd.f32 1e-10, %v545_v54  ;;  %v310_v38 = vmul.f32 1.442695, %v287_v52  ;;  %v273_v61 = vsub.f32 %v225_v49, %v251_v53 }
 0x157   :  { %v549_v58 = vpop.eup %548  ;;  %v329_v62 = vadd.f32 1e-10, %v547_v59  ;;  %562 = vpow2.f32 %v312_v33  ;;  %v290_v63 = vmin.f32 %v274_v56, 0.0 }
 0x158   :  { %v551_v0 = vpop.eup %550  ;;  %564 = vlog2.f32 %v330_v60  ;;  %v289_v4 = vmin.f32 %v273_v61, 0.0  ;;  %v257_v5 = vmul.f32 0.6931472, %v549_v58 }
 0x159   :  { %v553_v6 = vpop.eup %552  ;;  %566 = vlog2.f32 %v329_v62  ;;  %v316_v44 = vmul.f32 1.442695, %v290_v63  ;;  %v255_v8 = vmul.f32 0.6931472, %v551_v0 }
 0x15a   :  { %v555_v10 = vpop.eup %554  ;;  %v332_v11 = vadd.f32 1e-10, %v553_v6  ;;  %568 = vpow2.f32 %v310_v38  ;;  %v314_v12 = vmul.f32 1.442695, %v289_v4  ;;  %v276_v39 = vsub.f32 %v228_v3, %v257_v5 }
 0x15b   :  { %v331_v13 = vadd.f32 1e-10, %v555_v10  ;;  %570 = vpow2.f32 %v316_v44  ;;  %v275_v14 = vsub.f32 %v227_v7, %v255_v8 }
 0x15c   :  { %572 = vlog2.f32 %v332_v11  ;;  %v292_v15 = vmin.f32 %v276_v39, 0.0 }
 0x15d   :  { %v557_v9 = vpop.eup %556  ;;  %574 = vlog2.f32 %v331_v13  ;;  %v291_v16 = vmin.f32 %v275_v14, 0.0 }
 0x15e   :  { %v559_v17 = vpop.eup %558  ;;  %v334_v18 = vadd.f32 1e-10, %v557_v9  ;;  %576 = vpow2.f32 %v314_v12  ;;  %v320_v2 = vmul.f32 1.442695, %v292_v15 }
 0x15f   :  { %v561_v19 = vpop.eup %560  ;;  %v318_v20 = vmul.f32 1.442695, %v291_v16  ;;  %v345_v21 = vmul.f32 0.6931472, %v559_v17 }
 0x160   :  { %578 = vlog2.f32 %v334_v18  ;;  %v333_v22 = vadd.f32 1e-10, %v561_v19 }
 0x161   :  { %v563_v50 = vpop.eup %562  ;;  %580 = vpow2.f32 %v320_v2  ;;  %v376_v27 = vsub.f32 0.0, %v345_v21 }
 0x162   :  { %v565_v23 = vpop.eup %564  ;;  %582 = vlog2.f32 %v333_v22  ;;  %v336_v24 = vadd.f32 1e-10, %v563_v50 }
 0x163   :  { %v567_v25 = vpop.eup %566  ;;  %v349_v26 = vmul.f32 0.6931472, %v565_v23  ;;  %584 = vpow2.f32 %v318_v20  ;;  %v425_v42 = vsel %vm424_vm15, %v376_v27, 0.0 }
 0x164   :  { %v569_v45 = vpop.eup %568  ;;  %v347_v29 = vmul.f32 0.6931472, %v567_v25  ;;  %586 = vlog2.f32 %v336_v24 }
 0x165   :  { %v571_v30 = vpop.eup %570  ;;  %v335_v31 = vadd.f32 1e-10, %v569_v45  ;;  %v378_v35 = vsub.f32 0.0, %v349_v26 }
 0x166   :  { %v573_v34 = vpop.eup %572  ;;  %v377_v36 = vsub.f32 0.0, %v347_v29  ;;  %v338_v37 = vadd.f32 1e-10, %v571_v30 }
 0x167   :  { %v575_v40 = vpop.eup %574  ;;  %v353_v41 = vmul.f32 0.6931472, %v573_v34  ;;  %588 = vlog2.f32 %v335_v31  ;;  %v428_v48 = vsel %vm424_vm15, %v378_v35, 0.0 }
 0x168   :  { %v577_v57 = vpop.eup %576  ;;  %v426_v43 = vsel %vm424_vm15, %v377_v36, 0.0  ;;  %v351_v32 = vmul.f32 0.6931472, %v575_v40  ;;  %590 = vlog2.f32 %v338_v37 }
 0x169   :  { %v427_v46 = vadd.f32 %v426_v43, %v425_v42  ;;  %v337_v51 = vadd.f32 1e-10, %v577_v57  ;;  %v380_v49 = vsub.f32 0.0, %v353_v41  ;;  %v468_v57 = vld [vmem:[#allocation2] sm:$0x1] }
 0x16a   :  { %v579_v47 = vpop.eup %578  ;;  %v379_v52 = vsub.f32 0.0, %v351_v32 }
 0x16b   :  { %v581_v53 = vpop.eup %580  ;;  %v429_v54 = vadd.f32 %v428_v48, %v427_v46  ;;  %v357_v55 = vmul.f32 0.6931472, %v579_v47  ;;  %592 = vlog2.f32 %v337_v51  ;;  %v432_v58 = vsel %vm424_vm15, %v380_v49, 0.0 }
 0x16c   :  { %v583_v33 = vpop.eup %582  ;;  %v430_v56 = vsel %vm424_vm15, %v379_v52, 0.0  ;;  %v340_v59 = vadd.f32 1e-10, %v581_v53 }
 0x16d   :  { %v585_v1 = vpop.eup %584  ;;  %v431_v60 = vadd.f32 %v430_v56, %v429_v54  ;;  %v355_v38 = vmul.f32 0.6931472, %v583_v33  ;;  %v382_v63 = vsub.f32 0.0, %v357_v55 }
 0x16e   :  { %v587_v61 = vpop.eup %586  ;;  %594 = vlog2.f32 %v340_v59  ;;  %v339_v62 = vadd.f32 1e-10, %v585_v1 }
 0x16f   :  { %v433_v0 = vadd.f32 %v432_v58, %v431_v60  ;;  %v381_v3 = vsub.f32 0.0, %v355_v38  ;;  %v361_v4 = vmul.f32 0.6931472, %v587_v61  ;;  %v436_v10 = vsel %vm424_vm15, %v382_v63, 0.0 }
 0x170   :  { %596 = vlog2.f32 %v339_v62 }
 0x171   :  { %v589_v5 = vpop.eup %588  ;;  %v434_v6 = vsel %vm424_vm15, %v381_v3, 0.0  ;;  %v384_v11 = vsub.f32 0.0, %v361_v4 }
 0x172   :  { %v591_v7 = vpop.eup %590  ;;  %v435_v44 = vadd.f32 %v434_v6, %v433_v0  ;;  %v359_v8 = vmul.f32 0.6931472, %v589_v5 }
 0x173   :  { %v365_v13 = vmul.f32 0.6931472, %v591_v7  ;;  %v440_v18 = vsel %vm424_vm15, %v384_v11, 0.0 }
 0x174   :  { %v437_v12 = vadd.f32 %v436_v10, %v435_v44  ;;  %v383_v39 = vsub.f32 0.0, %v359_v8 }
 0x175   :  { %v593_v14 = vpop.eup %592  ;;  %v386_v2 = vsub.f32 0.0, %v365_v13 }
 0x176   :  { %v438_v15 = vsel %vm424_vm15, %v383_v39, 0.0  ;;  %v363_v9 = vmul.f32 0.6931472, %v593_v14 }
 0x177   :  { %v439_v16 = vadd.f32 %v438_v15, %v437_v12  ;;  %v444_v26 = vsel %vm424_vm15, %v386_v2, 0.0 }
 0x178   :  { %v595_v17 = vpop.eup %594  ;;  %v385_v19 = vsub.f32 0.0, %v363_v9 }
 0x179   :  { %v441_v20 = vadd.f32 %v440_v18, %v439_v16  ;;  %v369_v21 = vmul.f32 0.6931472, %v595_v17 }
 0x17a   :  { %v597_v22 = vpop.eup %596  ;;  %v442_v50 = vsel %vm424_vm15, %v385_v19, 0.0 }
 0x17b   :  { %v443_v23 = vadd.f32 %v442_v50, %v441_v20  ;;  %v388_v24 = vsub.f32 0.0, %v369_v21  ;;  %v367_v25 = vmul.f32 0.6931472, %v597_v22 }
 0x17d   :  { %v420_v45 = vsel %vm404_vm0, %v388_v24, 0.0  ;;  %v445_v27 = vadd.f32 %v444_v26, %v443_v23  ;;  %v387_v29 = vsub.f32 0.0, %v367_v25 }
 0x17e   :  { %v448_v30 = vsel %vm424_vm15, %v420_v45, 0.0 }
 0x17f   :  { %v446_v31 = vsel %vm424_vm15, %v387_v29, 0.0 }
 0x180   :  { %v447_v34 = vadd.f32 %v446_v31, %v445_v27 }
 0x182   :  { %v449_v35 = vadd.f32 %v448_v30, %v447_v34 }
 0x184   :  { %v456_v36 = vrot.slane %v449_v35, 4 }
 0x186   :  { %v457_v37 = vadd.f32 %v456_v36, %v449_v35 }
 0x188   :  { %v458_v40 = vrot.slane %v457_v37, 2 }
 0x18a   :  { %v459_v28 = vadd.f32 %v458_v40, %v457_v37 }
 0x18c   :  { %v460_v41 = vrot.slane %v459_v28, 1 }
 0x18e   :  { %v461_v42 = vadd.f32 %v460_v41, %v459_v28 }
 0x190   :  { %v469_v43 = vadd.f32 %v468_v57, %v461_v42 }
 0x192   :  { %471 = vst.msk [vmem:[#allocation2] sm:$0x1] %vm466_vm14, %v469_v43 }
 0x199   :  { %v475_v32 = vld [vmem:[#allocation2] sm:$0x1] }
 0x19a   :  { %v476_v46 = vmul.f32 0.01, %v475_v32 }
 0x19c   :  { %477 = vst.msk [vmem:[#allocation3] sm:$0x1] %vm466_vm14, %v476_v46 }
 0x19d   :  { %609 = shalt.err (!%p606_p4)
}
 0x19e   :  { %s610_s12 = scalar_lea.hbm %s771_s2, 16 }
 0x19f   :  { %p611_p5 = scmp.ne.s32.totalorder %s771_s2, %s610_s12  ;;  %p614_p6 = scmp.lt.u32.totalorder %s610_s12, %s771_s2 }
 0x1a1   :  { %p616_p7 = pnand %p614_p6, %p611_p5 }
 0x1a3   :  { %619 = shalt.err (!%p616_p7)
}
 0x1a4   :  { %487 = dma.vmem_to_hbm [thread:$0]  %s485_s8, 16, %s771_s2, [#allocation4]  }
 0x1a5   :  { %620 = dma.done.wait [#allocation4], 16  }
 0x1a6   :  { %621 = vsyncadd [#allocation4], 4294967280 }
 0x1a7   :  { %491 = vsyncpa [#allocation4], 1 }

</bundles_post_ra>
